<compile_context>
chip_gen: v7x
topology: tpu7x:2x2x1
jax: 0.10.0
libtpu: 0.0.40
codegen_flags: <defaults>
</compile_context>

<pallas_src>
import math

import jax
import jax.numpy as jnp
from jax.experimental import pallas as pl
from jax.experimental.pallas import tpu as pltpu


def _round_up(n: int, m: int) -> int:
    return (n + m - 1) // m * m


def _vmem_capacity_bytes() -> int:
    """Generation-aware VMEM capacity (v5e/v6e: 128 MiB, v7x: 64 MiB/TC)."""
    try:
        return int(pltpu.get_tpu_info().vmem_capacity_bytes)
    except Exception:
        return 64 * 1024 * 1024  # conservative default (works on all gens)


def _select_tiles(M, D, in_itemsize, out_itemsize, w_itemsize, n_outputs, vmem_cap):
    """Pick (TM, TN) row/column tiles from the VMEM budget."""
    usable = (vmem_cap * 3) // 4  # leave headroom (esp. v7x's 64 MiB per TC)

    # Resident weight footprint, counted with the default 2 pipeline buffers
    # per operand (conservative even if single-buffering succeeds).
    def weight_bytes(tn):
        return 2 * (2 * D * tn * w_itemsize) + 2 * tn * 4  # Wx^T + Wy^T + bias

    weight_budget = usable // 2
    TN = D
    if weight_bytes(D) > weight_budget:
        for cand in (2048, 1024, 512, 256, 128):
            if cand < D and D % cand == 0 and weight_bytes(cand) <= weight_budget:
                TN = cand
                break
        # TODO(synk): if D is huge and has no 128-multiple divisor, we fall
        # back to full-width weights (TM shrinks; may still exceed VMEM).

    # Row tile: x/y blocks are (TM, D), outputs (TM, TN); all double-buffered.
    row_budget = max(usable - weight_bytes(TN), 4 * 1024 * 1024)
    per_row = 2 * (2 * D * in_itemsize + n_outputs * TN * out_itemsize)
    TM = row_budget // max(per_row, 1)
    TM = max(8, min(4096, (int(TM) // 8) * 8))
    TM = min(TM, max(8, _round_up(M, 8)))
    return int(TM), int(TN)


def _gating_kernel(x_ref, y_ref, wxt_ref, wyt_ref, b_ref, out_ref, *gate_refs):
    x = x_ref[...]                       # (TM, D), input dtype
    y = y_ref[...]
    wd = wxt_ref.dtype                   # matmul operand dtype follows weights

    # Linear on the virtual concatenation: two MXU matmuls, f32 accumulation.
    logits = (
        jnp.dot(x.astype(wd), wxt_ref[...], preferred_element_type=jnp.float32)
        + jnp.dot(y.astype(wd), wyt_ref[...], preferred_element_type=jnp.float32)
        + b_ref[...]                     # (1, TN) f32, broadcasts over rows
    )
    gate = jax.nn.sigmoid(logits)        # f32 (EUP exp path)

    tn = out_ref.shape[-1]
    if tn == x_ref.shape[-1]:            # no column tiling: use full row tiles
        xs, ys = x, y
    else:                                # column tiling: this step's features
        col0 = pl.multiple_of(pl.program_id(1) * tn, tn)
        xs = x_ref[:, pl.ds(col0, tn)]
        ys = y_ref[:, pl.ds(col0, tn)]

    # Blend in f32 and cast once at the store:
    #   gate*x + (1-gate)*y == y + gate*(x - y)
    xs = xs.astype(jnp.float32)
    ys = ys.astype(jnp.float32)
    out_ref[...] = (ys + gate * (xs - ys)).astype(out_ref.dtype)
    if gate_refs:
        gate_refs[0][...] = gate.astype(gate_refs[0].dtype)


def prepare_gating_params(weight, bias, compute_dtype=None):
    """One-time parameter prep (hoisted off the per-call path).

    weight: (D, 2D) as in nn.Linear(2D, D); bias: (D,).
    Returns Wx^T, Wy^T (D, D) in `compute_dtype` (default: weight dtype; use
    bf16 when reduced matmul precision is acceptable) and bias (1, D) f32.
    """
    D = bias.shape[0]
    assert weight.shape == (D, 2 * D)
    dt = weight.dtype if compute_dtype is None else compute_dtype
    wxt = jnp.asarray(weight[:, :D].T, dtype=dt)   # (D, D)
    wyt = jnp.asarray(weight[:, D:].T, dtype=dt)   # (D, D)
    b = jnp.asarray(bias, dtype=jnp.float32).reshape(1, D)
    return wxt, wyt, b


def gating_mechanism(x, y, wxt, wyt, b, *, return_gate=True,
                     block_rows=None, block_cols=None):
    """x, y: (..., D); wxt/wyt/b from prepare_gating_params.

    Returns (gated_value, gate) if return_gate else gated_value.
    """
    assert x.shape == y.shape
    D = x.shape[-1]
    assert wxt.shape == (D, D) and wyt.shape == (D, D) and b.shape == (1, D)
    lead = x.shape[:-1]
    M = math.prod(lead) if lead else 1

    in_it = jnp.dtype(x.dtype).itemsize
    out_it = in_it
    w_it = jnp.dtype(wxt.dtype).itemsize
    n_out = 2 if return_gate else 1

    vmem_cap = _vmem_capacity_bytes()
    TM, TN = _select_tiles(M, D, in_it, out_it, w_it, n_out, vmem_cap)
    if block_rows is not None:
        TM = max(8, (min(block_rows, _round_up(M, 8)) // 8) * 8)
    if block_cols is not None and D % block_cols == 0 and \
            (block_cols == D or block_cols % 128 == 0):
        TN = block_cols

    # Copy-free 2-D views (collapse of contiguous leading dims: no HBM copy).
    x2 = x.reshape(M, D)
    y2 = y.reshape(M, D)

    # Ragged last row block is masked by Pallas; column blocks divide D.
    grid = (pl.cdiv(M, TM), pl.cdiv(D, TN))

    # VMEM accounting: 2 pipeline buffers for every BlockSpec input/output
    # (weights counted at 2x even if single-buffering succeeds).
    vmem_need = (
        2 * 2 * TM * D * in_it            # x, y row tiles
        + 2 * n_out * TM * TN * out_it    # out (+ gate) tiles
        + 2 * (2 * D * TN * w_it)         # Wx^T, Wy^T
        + 2 * TN * 4                      # bias
    )
    vmem_limit = int(min(vmem_cap, max(vmem_need + (8 << 20), 32 << 20)))

    cost = pl.CostEstimate(
        flops=4 * M * D * D + 6 * M * D,
        transcendentals=M * D,
        bytes_accessed=(2 + n_out) * M * D * in_it + 2 * D * D * w_it + D * 4,
    )

    out_shape = tuple(jax.ShapeDtypeStruct((M, D), x.dtype) for _ in range(n_out))

    def run(weight_buffers):
        def wspec(shape, index_map):
            if weight_buffers == 1:
                return pl.BlockSpec(shape, index_map,
                                    pipeline_mode=pl.Buffered(1))
            return pl.BlockSpec(shape, index_map)

        in_specs = [
            pl.BlockSpec((TM, D), lambda i, j: (i, 0)),       # x rows
            pl.BlockSpec((TM, D), lambda i, j: (i, 0)),       # y rows
            wspec((D, TN), lambda i, j: (0, j)),              # Wx^T
            wspec((D, TN), lambda i, j: (0, j)),              # Wy^T
            wspec((1, TN), lambda i, j: (0, j)),              # bias
        ]
        out_specs = tuple(
            pl.BlockSpec((TM, TN), lambda i, j: (i, j)) for _ in range(n_out)
        )
        return pl.pallas_call(
            _gating_kernel,
            out_shape=out_shape,
            grid=grid,
            in_specs=in_specs,
            out_specs=out_specs,
            compiler_params=pltpu.CompilerParams(
                # Row axis shards across TensorCores (megacore / v7x);
                # inner feature axis re-uses the resident row tiles.
                dimension_semantics=("parallel", "arbitrary"),
                vmem_limit_bytes=vmem_limit,
            ),
            cost_estimate=cost,
        )(x2, y2, wxt, wyt, b)

    # Weights/bias are grid-invariant when TN == D -> one buffer suffices.
    if TN == D:
        try:
            results = run(1)
        except Exception:
            # pipeline_mode=pl.Buffered(1) unsupported on this jax version;
            # default double buffering is already budgeted for above.
            results = run(2)
    else:
        results = run(2)

    outs = tuple(r.reshape(*lead, D) for r in results)
    if return_gate:
        return outs          # (gated_value, gate)
    return outs[0]


def _reference(x, y, weight, bias):
    combined = jnp.concatenate([x, y], axis=-1)
    logits = jnp.dot(combined, weight.T,
                     precision=jax.lax.Precision.HIGHEST) + bias
    gate = jax.nn.sigmoid(logits)
    return gate * x + (1.0 - gate) * y, gate


if __name__ == "__main__":
    key = jax.random.PRNGKey(0)
    batch, seq, hidden = 2, 8, 32

    kx, ky, kw, kb = jax.random.split(key, 4)
    x = jax.random.normal(kx, (batch, seq, hidden), dtype=jnp.float32)
    y = jax.random.normal(ky, (batch, seq, hidden), dtype=jnp.float32)

    # nn.Linear(2*hidden, hidden)-shaped params, uniform(-1/sqrt(fan_in), +).
    bound = 1.0 / math.sqrt(2 * hidden)
    weight = jax.random.uniform(kw, (hidden, 2 * hidden), jnp.float32, -bound, bound)
    bias = jax.random.uniform(kb, (hidden,), jnp.float32, -bound, bound)

    # One-time parameter prep (split/transpose hoisted off the hot path).
    wxt, wyt, b = prepare_gating_params(weight, bias)

    out, gate = gating_mechanism(x, y, wxt, wyt, b)
    jax.block_until_ready((out, gate))

    ref_out, ref_gate = _reference(x, y, weight, bias)
    # Tolerance covers possible MXU f32 multi-pass decomposition differences.
    assert jnp.allclose(out, ref_out, atol=2e-3, rtol=2e-3), \
        float(jnp.max(jnp.abs(out - ref_out)))
    assert jnp.allclose(gate, ref_gate, atol=2e-3, rtol=2e-3), \
        float(jnp.max(jnp.abs(gate - ref_gate)))

    print("KERNEL_OK")
</pallas_src>

<mosaic_0001>
module attributes {stable_mosaic.version = 11 : i64} {
  func.func @_gating_kernel(%arg0: i32, %arg1: i32, %arg2: memref<16x32xf32, #tpu.memory_space<vmem>>, %arg3: memref<16x32xf32, #tpu.memory_space<vmem>>, %arg4: memref<32x32xf32, #tpu.memory_space<vmem>>, %arg5: memref<32x32xf32, #tpu.memory_space<vmem>>, %arg6: memref<1x32xf32, #tpu.memory_space<vmem>>, %arg7: memref<16x32xf32, #tpu.memory_space<vmem>>, %arg8: memref<16x32xf32, #tpu.memory_space<vmem>>) attributes {dimension_semantics = [#tpu.dimension_semantics<parallel>, #tpu.dimension_semantics<arbitrary>], iteration_bounds = array<i64: 1, 1>, scalar_prefetch = 0 : i64, scratch_operands = 0 : i64, tpu.core_type = #tpu.core_type<tc>, window_params = [{transform_indices = @transform_0, window_bounds = array<i64: 16, 32>}, {transform_indices = @transform_1, window_bounds = array<i64: 16, 32>}, {pipeline_mode = #tpu.pipeline_mode<synchronous>, transform_indices = @transform_2, window_bounds = array<i64: 32, 32>}, {pipeline_mode = #tpu.pipeline_mode<synchronous>, transform_indices = @transform_3, window_bounds = array<i64: 32, 32>}, {pipeline_mode = #tpu.pipeline_mode<synchronous>, transform_indices = @transform_4, window_bounds = array<i64: 1, 32>}, {transform_indices = @transform_5, window_bounds = array<i64: 16, 32>}, {transform_indices = @transform_6, window_bounds = array<i64: 16, 32>}]} {
    %c0 = arith.constant 0 : index
    %c0_0 = arith.constant 0 : index
    %0 = vector.load %arg2[%c0, %c0_0] : memref<16x32xf32, #tpu.memory_space<vmem>>, vector<16x32xf32>
    %c0_1 = arith.constant 0 : index
    %c0_2 = arith.constant 0 : index
    %1 = vector.load %arg3[%c0_1, %c0_2] : memref<16x32xf32, #tpu.memory_space<vmem>>, vector<16x32xf32>
    %c0_3 = arith.constant 0 : index
    %c0_4 = arith.constant 0 : index
    %2 = vector.load %arg4[%c0_3, %c0_4] : memref<32x32xf32, #tpu.memory_space<vmem>>, vector<32x32xf32>
    %cst = arith.constant dense<0.000000e+00> : vector<16x32xf32>
    %3 = tpu.matmul %0, %2, %cst {dimension_numbers = #tpu.dot_dimension_numbers<[1], [0], [0], [1], [0, 0, 1, 1], [], []>} : vector<16x32xf32>, vector<32x32xf32>, vector<16x32xf32> -> vector<16x32xf32>
    %c0_5 = arith.constant 0 : index
    %c0_6 = arith.constant 0 : index
    %4 = vector.load %arg5[%c0_5, %c0_6] : memref<32x32xf32, #tpu.memory_space<vmem>>, vector<32x32xf32>
    %cst_7 = arith.constant dense<0.000000e+00> : vector<16x32xf32>
    %5 = tpu.matmul %1, %4, %cst_7 {dimension_numbers = #tpu.dot_dimension_numbers<[1], [0], [0], [1], [0, 0, 1, 1], [], []>} : vector<16x32xf32>, vector<32x32xf32>, vector<16x32xf32> -> vector<16x32xf32>
    %6 = arith.addf %3, %5 : vector<16x32xf32>
    %c0_8 = arith.constant 0 : index
    %c0_9 = arith.constant 0 : index
    %7 = vector.load %arg6[%c0_8, %c0_9] : memref<1x32xf32, #tpu.memory_space<vmem>>, vector<1x32xf32>
    %8 = vector.broadcast %7 : vector<1x32xf32> to vector<16x32xf32>
    %9 = arith.addf %6, %8 : vector<16x32xf32>
    %10 = arith.negf %9 : vector<16x32xf32>
    %11 = math.exp %10 : vector<16x32xf32>
    %cst_10 = arith.constant 1.000000e+00 : f32
    %12 = vector.broadcast %cst_10 : f32 to vector<16x32xf32>
    %13 = arith.addf %12, %11 : vector<16x32xf32>
    %14 = arith.divf %12, %13 : vector<16x32xf32>
    %15 = arith.subf %0, %1 : vector<16x32xf32>
    %16 = arith.mulf %14, %15 : vector<16x32xf32>
    %17 = arith.addf %1, %16 : vector<16x32xf32>
    %c0_11 = arith.constant 0 : index
    %c0_12 = arith.constant 0 : index
    %18 = vector.load %arg7[%c0_11, %c0_12] : memref<16x32xf32, #tpu.memory_space<vmem>>, vector<16x32xf32>
    tpu.vector_store %arg7[%c0_11, %c0_12], %17 {strides = array<i32>} : memref<16x32xf32, #tpu.memory_space<vmem>>, vector<16x32xf32>,
    %c0_13 = arith.constant 0 : index
    %c0_14 = arith.constant 0 : index
    %19 = vector.load %arg8[%c0_13, %c0_14] : memref<16x32xf32, #tpu.memory_space<vmem>>, vector<16x32xf32>
    tpu.vector_store %arg8[%c0_13, %c0_14], %14 {strides = array<i32>} : memref<16x32xf32, #tpu.memory_space<vmem>>, vector<16x32xf32>,
    return
  }
  func.func @transform_0(%arg0: i32, %arg1: i32) -> (i32, i32) {
    %c0_i32 = arith.constant 0 : i32
    %c0_i32_0 = arith.constant 0 : i32
    return %arg0, %c0_i32 : i32, i32
  }
  func.func @transform_1(%arg0: i32, %arg1: i32) -> (i32, i32) {
    %c0_i32 = arith.constant 0 : i32
    %c0_i32_0 = arith.constant 0 : i32
    return %arg0, %c0_i32 : i32, i32
  }
  func.func @transform_2(%arg0: i32, %arg1: i32) -> (i32, i32) {
    %c0_i32 = arith.constant 0 : i32
    %c0_i32_0 = arith.constant 0 : i32
    return %c0_i32, %arg1 : i32, i32
  }
  func.func @transform_3(%arg0: i32, %arg1: i32) -> (i32, i32) {
    %c0_i32 = arith.constant 0 : i32
    %c0_i32_0 = arith.constant 0 : i32
    return %c0_i32, %arg1 : i32, i32
  }
  func.func @transform_4(%arg0: i32, %arg1: i32) -> (i32, i32) {
    %c0_i32 = arith.constant 0 : i32
    %c0_i32_0 = arith.constant 0 : i32
    return %c0_i32, %arg1 : i32, i32
  }
  func.func @transform_5(%arg0: i32, %arg1: i32) -> (i32, i32) {
    %c0_i32 = arith.constant 0 : i32
    return %arg0, %arg1 : i32, i32
  }
  func.func @transform_6(%arg0: i32, %arg1: i32) -> (i32, i32) {
    %c0_i32 = arith.constant 0 : i32
    return %arg0, %arg1 : i32, i32
  }
}

module attributes {stable_mosaic.version = 11 : i64} {
  func.func @_gating_kernel(%arg0: i32, %arg1: i32, %arg2: memref<16x32xf32, #tpu.memory_space<vmem>>, %arg3: memref<16x32xf32, #tpu.memory_space<vmem>>, %arg4: memref<32x32xf32, #tpu.memory_space<vmem>>, %arg5: memref<32x32xf32, #tpu.memory_space<vmem>>, %arg6: memref<1x32xf32, #tpu.memory_space<vmem>>, %arg7: memref<16x32xf32, #tpu.memory_space<vmem>>, %arg8: memref<16x32xf32, #tpu.memory_space<vmem>>) attributes {dimension_semantics = [#tpu.dimension_semantics<parallel>, #tpu.dimension_semantics<arbitrary>], iteration_bounds = array<i64: 1, 1>, scalar_prefetch = 0 : i64, scratch_operands = 0 : i64, tpu.core_type = #tpu.core_type<tc>, window_params = [{transform_indices = @transform_0, window_bounds = array<i64: 16, 32>}, {transform_indices = @transform_1, window_bounds = array<i64: 16, 32>}, {transform_indices = @transform_2, window_bounds = array<i64: 32, 32>}, {transform_indices = @transform_3, window_bounds = array<i64: 32, 32>}, {transform_indices = @transform_4, window_bounds = array<i64: 1, 32>}, {transform_indices = @transform_5, window_bounds = array<i64: 16, 32>}, {transform_indices = @transform_6, window_bounds = array<i64: 16, 32>}]} {
    %c0 = arith.constant 0 : index
    %c0_0 = arith.constant 0 : index
    %0 = vector.load %arg2[%c0, %c0_0] : memref<16x32xf32, #tpu.memory_space<vmem>>, vector<16x32xf32>
    %c0_1 = arith.constant 0 : index
    %c0_2 = arith.constant 0 : index
    %1 = vector.load %arg3[%c0_1, %c0_2] : memref<16x32xf32, #tpu.memory_space<vmem>>, vector<16x32xf32>
    %c0_3 = arith.constant 0 : index
    %c0_4 = arith.constant 0 : index
    %2 = vector.load %arg4[%c0_3, %c0_4] : memref<32x32xf32, #tpu.memory_space<vmem>>, vector<32x32xf32>
    %cst = arith.constant dense<0.000000e+00> : vector<16x32xf32>
    %3 = tpu.matmul %0, %2, %cst {dimension_numbers = #tpu.dot_dimension_numbers<[1], [0], [0], [1], [0, 0, 1, 1], [], []>} : vector<16x32xf32>, vector<32x32xf32>, vector<16x32xf32> -> vector<16x32xf32>
    %c0_5 = arith.constant 0 : index
    %c0_6 = arith.constant 0 : index
    %4 = vector.load %arg5[%c0_5, %c0_6] : memref<32x32xf32, #tpu.memory_space<vmem>>, vector<32x32xf32>
    %cst_7 = arith.constant dense<0.000000e+00> : vector<16x32xf32>
    %5 = tpu.matmul %1, %4, %cst_7 {dimension_numbers = #tpu.dot_dimension_numbers<[1], [0], [0], [1], [0, 0, 1, 1], [], []>} : vector<16x32xf32>, vector<32x32xf32>, vector<16x32xf32> -> vector<16x32xf32>
    %6 = arith.addf %3, %5 : vector<16x32xf32>
    %c0_8 = arith.constant 0 : index
    %c0_9 = arith.constant 0 : index
    %7 = vector.load %arg6[%c0_8, %c0_9] : memref<1x32xf32, #tpu.memory_space<vmem>>, vector<1x32xf32>
    %8 = vector.broadcast %7 : vector<1x32xf32> to vector<16x32xf32>
    %9 = arith.addf %6, %8 : vector<16x32xf32>
    %10 = arith.negf %9 : vector<16x32xf32>
    %11 = math.exp %10 : vector<16x32xf32>
    %cst_10 = arith.constant 1.000000e+00 : f32
    %12 = vector.broadcast %cst_10 : f32 to vector<16x32xf32>
    %13 = arith.addf %12, %11 : vector<16x32xf32>
    %14 = arith.divf %12, %13 : vector<16x32xf32>
    %15 = arith.subf %0, %1 : vector<16x32xf32>
    %16 = arith.mulf %14, %15 : vector<16x32xf32>
    %17 = arith.addf %1, %16 : vector<16x32xf32>
    %c0_11 = arith.constant 0 : index
    %c0_12 = arith.constant 0 : index
    %18 = vector.load %arg7[%c0_11, %c0_12] : memref<16x32xf32, #tpu.memory_space<vmem>>, vector<16x32xf32>
    tpu.vector_store %arg7[%c0_11, %c0_12], %17 {strides = array<i32>} : memref<16x32xf32, #tpu.memory_space<vmem>>, vector<16x32xf32>,
    %c0_13 = arith.constant 0 : index
    %c0_14 = arith.constant 0 : index
    %19 = vector.load %arg8[%c0_13, %c0_14] : memref<16x32xf32, #tpu.memory_space<vmem>>, vector<16x32xf32>
    tpu.vector_store %arg8[%c0_13, %c0_14], %14 {strides = array<i32>} : memref<16x32xf32, #tpu.memory_space<vmem>>, vector<16x32xf32>,
    return
  }
  func.func @transform_0(%arg0: i32, %arg1: i32) -> (i32, i32) {
    %c0_i32 = arith.constant 0 : i32
    %c0_i32_0 = arith.constant 0 : i32
    return %arg0, %c0_i32 : i32, i32
  }
  func.func @transform_1(%arg0: i32, %arg1: i32) -> (i32, i32) {
    %c0_i32 = arith.constant 0 : i32
    %c0_i32_0 = arith.constant 0 : i32
    return %arg0, %c0_i32 : i32, i32
  }
  func.func @transform_2(%arg0: i32, %arg1: i32) -> (i32, i32) {
    %c0_i32 = arith.constant 0 : i32
    %c0_i32_0 = arith.constant 0 : i32
    return %c0_i32, %arg1 : i32, i32
  }
  func.func @transform_3(%arg0: i32, %arg1: i32) -> (i32, i32) {
    %c0_i32 = arith.constant 0 : i32
    %c0_i32_0 = arith.constant 0 : i32
    return %c0_i32, %arg1 : i32, i32
  }
  func.func @transform_4(%arg0: i32, %arg1: i32) -> (i32, i32) {
    %c0_i32 = arith.constant 0 : i32
    %c0_i32_0 = arith.constant 0 : i32
    return %c0_i32, %arg1 : i32, i32
  }
  func.func @transform_5(%arg0: i32, %arg1: i32) -> (i32, i32) {
    %c0_i32 = arith.constant 0 : i32
    return %arg0, %arg1 : i32, i32
  }
  func.func @transform_6(%arg0: i32, %arg1: i32) -> (i32, i32) {
    %c0_i32 = arith.constant 0 : i32
    return %arg0, %arg1 : i32, i32
  }
}

</mosaic_0001>

<bundles_post_ra>
// kernel: tpu_custom_call.1
= control target key start
LH: loop header
LB: loop body
LE: loop exit
PB: predicated region body
PF: predicated region fallthrough
CT: control target
= control target key end

     0   :  { %12 = vsyncpa [#allocation3], 0  ;;  %s700_s0 = inlined_call_operand.hbm [shape: f32[16,32], index: 0, kind: input, shape index: {}]   ;;  %s701_s1 = inlined_call_operand.hbm [shape: f32[16,32], index: 1, kind: input, shape index: {}]   ;;  %s702_s2 = inlined_call_operand.hbm [shape: f32[32,32], index: 2, kind: input, shape index: {}]   ;;  %s703_s3 = inlined_call_operand.hbm [shape: f32[32,32], index: 3, kind: input, shape index: {}]   ;;  %s704_s4 = inlined_call_operand.vmem [shape: f32[1,32], index: 4, kind: input, shape index: {}]   ;;  %s705_s5 = inlined_call_operand.hbm [shape: f32[16,32], index: 5, kind: output, shape index: {0}]   ;;  %s706_s6 = inlined_call_operand.hbm [shape: f32[16,32], index: 6, kind: output, shape index: {1}]  }
   0x1   :  { %13 = vsyncpa [#allocation6], 0 }
   0x2   :  { %14 = vsyncpa [#allocation9], 0 }
   0x3   :  { %15 = vsyncpa [#allocation4], 0 }
   0x4   :  { %16 = vsyncpa [#allocation12], 0  ;;  %s537_s21 = smov [#allocation5]   ;;  %s538_s23 = smov [#allocation2]  }
   0x5   :  { %s34_s22 = sshll.u32 %s537_s21, 4  ;;  %s22_s24 = sshll.u32 %s538_s23, 4  ;;  %s35_s22 = int_to_ptr.vmem [resolvable:$true] %s34_s22  ;;  %s580_s24 = int_to_ptr.vmem [resolvable:$true] %s22_s24 }
   0x6   :  { %s395_s27 = scalar_lea.hbm %s701_s1, 256 }
   0x7   :  { %p396_p0 = scmp.ne.s32.totalorder %s701_s1, %s395_s27  ;;  %p399_p1 = scmp.lt.u32.totalorder %s395_s27, %s701_s1 }
   0x9   :  { %p401_p2 = pnand %p399_p1, %p396_p0 }
   0xb   :  { %404 = shalt.err (!%p401_p2)
}
   0xc   :  { %s405_s8 = scalar_lea.vmem %s35_s22, 256  ;;  %p410_p4 = scmp.lt.s32.totalorder %s35_s22, %s35_s22 }
   0xd   :  { %p406_p3 = scmp.ne.s32.totalorder %s35_s22, %s405_s8  ;;  %p411_p5 = scmp.lt.s32.totalorder %s405_s8, %s405_s8 }
   0xf   :  { %p412_p6 = por %p411_p5, %p410_p4 }
  0x11   :  { %p413_p7 = pnand %p412_p6, %p406_p3 }
  0x13   :  { %416 = shalt.err (!%p413_p7)
}
  0x14   :  { %s539_s9 = smov 128   ;;  %s540_s10 = smov 8  }
  0x15   :  { %40 = dma.hbm_to_vmem [thread:$0]  %s701_s1, 256, %s35_s22, [#allocation6], %s539_s9, %s539_s9, %s540_s10  }
  0x16   :  { %s417_s15 = scalar_lea.hbm %s700_s0, 256 }
  0x17   :  { %p418_p8 = scmp.ne.s32.totalorder %s700_s0, %s417_s15  ;;  %p421_p9 = scmp.lt.u32.totalorder %s417_s15, %s700_s0 }
  0x19   :  { %p423_p10 = pnand %p421_p9, %p418_p8 }
  0x1b   :  { %426 = shalt.err (!%p423_p10)
}
  0x1c   :  { %s427_s20 = scalar_lea.vmem %s580_s24, 256  ;;  %p432_p12 = scmp.lt.s32.totalorder %s580_s24, %s580_s24 }
  0x1d   :  { %p428_p11 = scmp.ne.s32.totalorder %s580_s24, %s427_s20  ;;  %p433_p13 = scmp.lt.s32.totalorder %s427_s20, %s427_s20 }
  0x1f   :  { %p434_p0 = por %p433_p13, %p432_p12 }
  0x21   :  { %p435_p1 = pnand %p434_p0, %p428_p11 }
  0x23   :  { %438 = shalt.err (!%p435_p1)
}
  0x24   :  { %28 = dma.hbm_to_vmem [thread:$0]  %s700_s0, 256, %s580_s24, [#allocation3], %s539_s9, %s539_s9, %s540_s10  }
  0x25   :  { %s541_s22 = smov [#allocation7]   ;;  %s542_s25 = smov [#allocation8]  }
  0x26   :  { %s46_s23 = sshll.u32 %s541_s22, 4  ;;  %s58_s26 = sshll.u32 %s542_s25, 4  ;;  %s47_s23 = int_to_ptr.vmem [resolvable:$true] %s46_s23  ;;  %s617_s26 = int_to_ptr.vmem [resolvable:$true] %s58_s26 }
  0x27   :  { %s439_s29 = scalar_lea.hbm %s702_s2, 512 }
  0x28   :  { %p440_p2 = scmp.ne.s32.totalorder %s702_s2, %s439_s29  ;;  %p443_p3 = scmp.lt.u32.totalorder %s439_s29, %s702_s2 }
  0x2a   :  { %p445_p4 = pnand %p443_p3, %p440_p2 }
  0x2c   :  { %448 = shalt.err (!%p445_p4)
}
  0x2d   :  { %s449_s0 = scalar_lea.vmem %s47_s23, 512  ;;  %p454_p6 = scmp.lt.s32.totalorder %s47_s23, %s47_s23 }
  0x2e   :  { %p450_p5 = scmp.ne.s32.totalorder %s47_s23, %s449_s0  ;;  %p455_p7 = scmp.lt.s32.totalorder %s449_s0, %s449_s0 }
  0x30   :  { %p456_p8 = por %p455_p7, %p454_p6 }
  0x32   :  { %p457_p9 = pnand %p456_p8, %p450_p5 }
  0x34   :  { %460 = shalt.err (!%p457_p9)
}
  0x35   :  { %52 = dma.hbm_to_vmem [thread:$0]  %s702_s2, 512, %s47_s23, [#allocation6], %s539_s9, %s539_s9, %s540_s10  }
  0x36   :  { %s461_s15 = scalar_lea.hbm %s703_s3, 512 }
  0x37   :  { %p462_p10 = scmp.ne.s32.totalorder %s703_s3, %s461_s15  ;;  %p465_p11 = scmp.lt.u32.totalorder %s461_s15, %s703_s3 }
  0x39   :  { %p467_p12 = pnand %p465_p11, %p462_p10 }
  0x3b   :  { %470 = shalt.err (!%p467_p12)
}
  0x3c   :  { %s471_s20 = scalar_lea.vmem %s617_s26, 512  ;;  %p476_p0 = scmp.lt.s32.totalorder %s617_s26, %s617_s26 }
  0x3d   :  { %p472_p13 = scmp.ne.s32.totalorder %s617_s26, %s471_s20  ;;  %p477_p1 = scmp.lt.s32.totalorder %s471_s20, %s471_s20 }
  0x3f   :  { %p478_p2 = por %p477_p1, %p476_p0 }
  0x41   :  { %p479_p3 = pnand %p478_p2, %p472_p13 }
  0x43   :  { %482 = shalt.err (!%p479_p3)
}
  0x44   :  { %64 = dma.hbm_to_vmem [thread:$0]  %s703_s3, 512, %s617_s26, [#allocation9], %s539_s9, %s539_s9, %s540_s10  }
  0x45   :  { %527 = dma.done.wait [#allocation3], 256  }
  0x46   :  { %528 = vsyncadd [#allocation3], 4294967040 }
  0x47   :  { %529 = dma.done.wait [#allocation6], 768  }
  0x48   :  { %530 = vsyncadd [#allocation6], 4294966528 }
  0x49   :  { %531 = dma.done.wait [#allocation9], 512  }
  0x4a   :  { %532 = vsyncadd [#allocation9], 4294966784  ;;  %v87_v0 = vld [vmem:[#allocation8] sm:$0xff]  ;;  %v88_v1 = vld [vmem:[#allocation8 + $0x8] sm:$0xff]  ;;  %vm91_vm0 = vcmask 261120   ;;  %s543_s22 = smov [#allocation11]  }
  0x4b   :  { %v83_v2 = vld [vmem:[#allocation7] sm:$0xff]  ;;  %v361_v3 = vpack.c.bf16 %v88_v1, %v87_v0  ;;  %v84_v4 = vld [vmem:[#allocation7 + $0x8] sm:$0xff]  ;;  %v89_v5 = vld [vmem:[#allocation8 + $0x10] sm:$0xff]  ;;  %s302_s23 = sshll.u32 %s543_s22, 4  ;;  %s303_s23 = int_to_ptr.vmem [resolvable:$true] %s302_s23 }
  0x4c   :  { %v90_v6 = vld [vmem:[#allocation8 + $0x18] sm:$0xff]  ;;  %v369_v7 = vpack.c.bf16 %v84_v4, %v83_v2  ;;  %v85_v9 = vld [vmem:[#allocation7 + $0x10] sm:$0xff]  ;;  %v79_v13 = vld [vmem:[#allocation2] sm:$0xff]  ;;  %s483_s26 = scalar_lea.vmem %s303_s23, 256  ;;  %p488_p5 = scmp.lt.s32.totalorder %s303_s23, %s303_s23 }
  0x4d   :  { %v365_v8 = vpack.c.bf16 %v90_v6, %v89_v5  ;;  %v86_v10 = vld [vmem:[#allocation7 + $0x18] sm:$0xff]  ;;  %v654_v11 = vld [vmem:[#allocation5] sm:$0xff]  ;;  %362 = vmatprep.subr.bf16.mxu1 %v361_v3  ;;  %358 = vmatprep.mubr.msk.f32.mxu0 %vm91_vm0, %v79_v13  ;;  %v80_v15 = vld [vmem:[#allocation2 + $0x8] sm:$0xff]  ;;  %p484_p4 = scmp.ne.s32.totalorder %s303_s23, %s483_s26  ;;  %p489_p6 = scmp.lt.s32.totalorder %s483_s26, %s483_s26 }
  0x4e   :  { %v373_v12 = vpack.c.bf16 %v86_v10, %v85_v9  ;;  %347 = vmatprep.mubr.msk.f32.mxu1 %vm91_vm0, %v654_v11  ;;  %370 = vmatprep.subr.bf16.mxu0 %v369_v7  ;;  %v82_v14 = vld [vmem:[#allocation5 + $0x8] sm:$0xff]  ;;  %v324_v18 = vld [vmem:[%s704_s4] ss:$0 sm:$0xff]  ;;  %v275_v32 = vsub.f32 %v79_v13, %v654_v11  ;;  %s544_s4 = smov [#allocation10]  }
  0x4f   :  { %364 = vmatpush3.bf16.msra.mxu1 %v361_v3  ;;  %372 = vmatpush3.bf16.msra.mxu0 %v369_v7  ;;  %v276_v31 = vsub.f32 %v80_v15, %v82_v14  ;;  %s290_s25 = sshll.u32 %s544_s4, 4  ;;  %p490_p7 = por %p489_p6, %p488_p5  ;;  %s291_s25 = int_to_ptr.vmem [resolvable:$true] %s290_s25 }
  0x50   :  { %366 = vmatprep.subr.bf16.mxu1 %v365_v8  ;;  %374 = vmatprep.subr.bf16.mxu0 %v373_v12 }
  0x51   :  { %p491_p8 = pnand %p490_p7, %p484_p4 }
  0x53   :  { %368 = vmatpush3.bf16.msra.mxu1 %v365_v8  ;;  %376 = vmatpush3.bf16.msra.mxu0 %v373_v12 }
  0x56   :  { %348 = vmatmul.mubr.msk.f32.vlgmr.msra.gmra.mrb[0].mxu1 %vm91_vm0, %v82_v14  ;;  %359 = vmatmul.mubr.msk.f32.vlgmr.msra.gmra.mrb[0].mxu0 %vm91_vm0, %v80_v15 }
 0x129   :  { %v349_v16 = vpop.f32.mrb[0].mxu1  ;;  %v360_v17 = vpop.f32.mrb[0].mxu0 }
 0x12a   :  { %v164_v19 = vpop.f32.mrb[1].mxu1  ;;  %v251_v20 = vadd.f32 %v360_v17, %v349_v16  ;;  %v245_v21 = vpop.f32.mrb[1].mxu0 }
 0x12b   :  { %v246_v22 = vadd.f32 %v245_v21, %v164_v19 }
 0x12c   :  { %v262_v23 = vadd.f32 %v324_v18, %v251_v20 }
 0x12d   :  { %v261_v24 = vadd.f32 %v324_v18, %v246_v22 }
 0x12e   :  { %v326_v25 = vmul.f32 -1.442695, %v262_v23 }
 0x12f   :  { %v325_v26 = vmul.f32 -1.442695, %v261_v24 }
 0x130   :  { %387 = vpow2.f32 %v326_v25 }
 0x131   :  { %389 = vpow2.f32 %v325_v26 }
 0x13a   :  { %v388_v27 = vpop.eup %387 }
 0x13b   :  { %v390_v28 = vpop.eup %389  ;;  %v270_v29 = vadd.f32 1.0, %v388_v27 }
 0x13c   :  { %v269_v30 = vadd.f32 1.0, %v390_v28 }
 0x13d   :  { %391 = vrcp.f32 %v270_v29 }
 0x13e   :  { %393 = vrcp.f32 %v269_v30 }
 0x147   :  { %v392_v33 = vpop.eup %391 }
 0x148   :  { %v394_v34 = vpop.eup %393  ;;  %284 = vst.msk [vmem:[#allocation11 + $0x8] sm:$0xff] %vm91_vm0, %v392_v33  ;;  %v278_v35 = vmul.f32 %v392_v33, %v276_v31 }
 0x149   :  { %283 = vst.msk [vmem:[#allocation11] sm:$0xff] %vm91_vm0, %v394_v34  ;;  %v277_v36 = vmul.f32 %v394_v34, %v275_v32 }
 0x14a   :  { %v280_v37 = vadd.f32 %v278_v35, %v82_v14 }
 0x14b   :  { %494 = shalt.err (!%p491_p8)
}
 0x14c   :  { %s495_s29 = scalar_lea.hbm %s706_s6, 256 }
 0x14d   :  { %p496_p9 = scmp.ne.s32.totalorder %s706_s6, %s495_s29  ;;  %p499_p10 = scmp.lt.u32.totalorder %s495_s29, %s706_s6 }
 0x14f   :  { %p501_p11 = pnand %p499_p10, %p496_p9 }
 0x151   :  { %504 = shalt.err (!%p501_p11)
}
 0x152   :  { %308 = dma.vmem_to_hbm [thread:$0]  %s303_s23, 256, %s706_s6, [#allocation12], %s539_s9, %s539_s9, %s540_s10   ;;  %v279_v38 = vadd.f32 %v277_v36, %v654_v11  ;;  %282 = vst.msk [vmem:[#allocation10 + $0x8] sm:$0xff] %vm91_vm0, %v280_v37 }
 0x153   :  { %s505_s12 = scalar_lea.vmem %s291_s25, 256  ;;  %p510_p13 = scmp.lt.s32.totalorder %s291_s25, %s291_s25 }
 0x154   :  { %281 = vst.msk [vmem:[#allocation10] sm:$0xff] %vm91_vm0, %v279_v38  ;;  %p506_p12 = scmp.ne.s32.totalorder %s291_s25, %s505_s12  ;;  %p511_p0 = scmp.lt.s32.totalorder %s505_s12, %s505_s12 }
 0x156   :  { %p512_p1 = por %p511_p0, %p510_p13 }
 0x158   :  { %p513_p2 = pnand %p512_p1, %p506_p12 }
 0x15a   :  { %516 = shalt.err (!%p513_p2)
}
 0x15b   :  { %s517_s15 = scalar_lea.hbm %s705_s5, 256 }
 0x15c   :  { %p518_p3 = scmp.ne.s32.totalorder %s705_s5, %s517_s15  ;;  %p521_p4 = scmp.lt.u32.totalorder %s517_s15, %s705_s5 }
 0x15e   :  { %p523_p5 = pnand %p521_p4, %p518_p3 }
 0x160   :  { %526 = shalt.err (!%p523_p5)
}
 0x161   :  { %296 = dma.vmem_to_hbm [thread:$0]  %s291_s25, 256, %s705_s5, [#allocation4], %s539_s9, %s539_s9, %s540_s10  }
 0x162   :  { %533 = dma.done.wait [#allocation4], 256  }
 0x163   :  { %534 = vsyncadd [#allocation4], 4294967040 }
 0x164   :  { %535 = dma.done.wait [#allocation12], 256  }
 0x165   :  { %536 = vsyncadd [#allocation12], 4294967040 }
 0x166   :  { %315 = vsyncpa [#allocation3], 1 }
 0x167   :  { %316 = vsyncpa [#allocation6], 1 }
 0x168   :  { %317 = vsyncpa [#allocation9], 1 }
 0x169   :  { %318 = vsyncpa [#allocation4], 1 }
 0x16a   :  { %319 = vsyncpa [#allocation12], 1 }

// kernel: tpu_custom_call.1
= control target key start
LH: loop header
LB: loop body
LE: loop exit
PB: predicated region body
PF: predicated region fallthrough
CT: control target
= control target key end

     0   :  { %12 = vsyncpa [#allocation3], 0  ;;  %s700_s0 = inlined_call_operand.hbm [shape: f32[16,32], index: 0, kind: input, shape index: {}]   ;;  %s701_s1 = inlined_call_operand.hbm [shape: f32[16,32], index: 1, kind: input, shape index: {}]   ;;  %s702_s2 = inlined_call_operand.hbm [shape: f32[32,32], index: 2, kind: input, shape index: {}]   ;;  %s703_s3 = inlined_call_operand.hbm [shape: f32[32,32], index: 3, kind: input, shape index: {}]   ;;  %s704_s4 = inlined_call_operand.vmem [shape: f32[1,32], index: 4, kind: input, shape index: {}]   ;;  %s705_s5 = inlined_call_operand.hbm [shape: f32[16,32], index: 5, kind: output, shape index: {0}]   ;;  %s706_s6 = inlined_call_operand.hbm [shape: f32[16,32], index: 6, kind: output, shape index: {1}]  }
   0x1   :  { %13 = vsyncpa [#allocation6], 0 }
   0x2   :  { %14 = vsyncpa [#allocation9], 0 }
   0x3   :  { %15 = vsyncpa [#allocation4], 0 }
   0x4   :  { %16 = vsyncpa [#allocation12], 0  ;;  %s537_s21 = smov [#allocation5]   ;;  %s538_s23 = smov [#allocation2]  }
   0x5   :  { %s34_s22 = sshll.u32 %s537_s21, 4  ;;  %s22_s24 = sshll.u32 %s538_s23, 4  ;;  %s35_s22 = int_to_ptr.vmem [resolvable:$true] %s34_s22  ;;  %s580_s24 = int_to_ptr.vmem [resolvable:$true] %s22_s24 }
   0x6   :  { %s395_s27 = scalar_lea.hbm %s701_s1, 256 }
   0x7   :  { %p396_p0 = scmp.ne.s32.totalorder %s701_s1, %s395_s27  ;;  %p399_p1 = scmp.lt.u32.totalorder %s395_s27, %s701_s1 }
   0x9   :  { %p401_p2 = pnand %p399_p1, %p396_p0 }
   0xb   :  { %404 = shalt.err (!%p401_p2)
}
   0xc   :  { %s405_s8 = scalar_lea.vmem %s35_s22, 256  ;;  %p410_p4 = scmp.lt.s32.totalorder %s35_s22, %s35_s22 }
   0xd   :  { %p406_p3 = scmp.ne.s32.totalorder %s35_s22, %s405_s8  ;;  %p411_p5 = scmp.lt.s32.totalorder %s405_s8, %s405_s8 }
   0xf   :  { %p412_p6 = por %p411_p5, %p410_p4 }
  0x11   :  { %p413_p7 = pnand %p412_p6, %p406_p3 }
  0x13   :  { %416 = shalt.err (!%p413_p7)
}
  0x14   :  { %s539_s9 = smov 128   ;;  %s540_s10 = smov 8  }
  0x15   :  { %40 = dma.hbm_to_vmem [thread:$0]  %s701_s1, 256, %s35_s22, [#allocation6], %s539_s9, %s539_s9, %s540_s10  }
  0x16   :  { %s417_s15 = scalar_lea.hbm %s700_s0, 256 }
  0x17   :  { %p418_p8 = scmp.ne.s32.totalorder %s700_s0, %s417_s15  ;;  %p421_p9 = scmp.lt.u32.totalorder %s417_s15, %s700_s0 }
  0x19   :  { %p423_p10 = pnand %p421_p9, %p418_p8 }
  0x1b   :  { %426 = shalt.err (!%p423_p10)
}
  0x1c   :  { %s427_s20 = scalar_lea.vmem %s580_s24, 256  ;;  %p432_p12 = scmp.lt.s32.totalorder %s580_s24, %s580_s24 }
  0x1d   :  { %p428_p11 = scmp.ne.s32.totalorder %s580_s24, %s427_s20  ;;  %p433_p13 = scmp.lt.s32.totalorder %s427_s20, %s427_s20 }
  0x1f   :  { %p434_p0 = por %p433_p13, %p432_p12 }
  0x21   :  { %p435_p1 = pnand %p434_p0, %p428_p11 }
  0x23   :  { %438 = shalt.err (!%p435_p1)
}
  0x24   :  { %28 = dma.hbm_to_vmem [thread:$0]  %s700_s0, 256, %s580_s24, [#allocation3], %s539_s9, %s539_s9, %s540_s10  }
  0x25   :  { %s541_s22 = smov [#allocation7]   ;;  %s542_s25 = smov [#allocation8]  }
  0x26   :  { %s46_s23 = sshll.u32 %s541_s22, 4  ;;  %s58_s26 = sshll.u32 %s542_s25, 4  ;;  %s47_s23 = int_to_ptr.vmem [resolvable:$true] %s46_s23  ;;  %s617_s26 = int_to_ptr.vmem [resolvable:$true] %s58_s26 }
  0x27   :  { %s439_s29 = scalar_lea.hbm %s702_s2, 512 }
  0x28   :  { %p440_p2 = scmp.ne.s32.totalorder %s702_s2, %s439_s29  ;;  %p443_p3 = scmp.lt.u32.totalorder %s439_s29, %s702_s2 }
  0x2a   :  { %p445_p4 = pnand %p443_p3, %p440_p2 }
  0x2c   :  { %448 = shalt.err (!%p445_p4)
}
  0x2d   :  { %s449_s0 = scalar_lea.vmem %s47_s23, 512  ;;  %p454_p6 = scmp.lt.s32.totalorder %s47_s23, %s47_s23 }
  0x2e   :  { %p450_p5 = scmp.ne.s32.totalorder %s47_s23, %s449_s0  ;;  %p455_p7 = scmp.lt.s32.totalorder %s449_s0, %s449_s0 }
  0x30   :  { %p456_p8 = por %p455_p7, %p454_p6 }
  0x32   :  { %p457_p9 = pnand %p456_p8, %p450_p5 }
  0x34   :  { %460 = shalt.err (!%p457_p9)
}
  0x35   :  { %52 = dma.hbm_to_vmem [thread:$0]  %s702_s2, 512, %s47_s23, [#allocation6], %s539_s9, %s539_s9, %s540_s10  }
  0x36   :  { %s461_s15 = scalar_lea.hbm %s703_s3, 512 }
  0x37   :  { %p462_p10 = scmp.ne.s32.totalorder %s703_s3, %s461_s15  ;;  %p465_p11 = scmp.lt.u32.totalorder %s461_s15, %s703_s3 }
  0x39   :  { %p467_p12 = pnand %p465_p11, %p462_p10 }
  0x3b   :  { %470 = shalt.err (!%p467_p12)
}
  0x3c   :  { %s471_s20 = scalar_lea.vmem %s617_s26, 512  ;;  %p476_p0 = scmp.lt.s32.totalorder %s617_s26, %s617_s26 }
  0x3d   :  { %p472_p13 = scmp.ne.s32.totalorder %s617_s26, %s471_s20  ;;  %p477_p1 = scmp.lt.s32.totalorder %s471_s20, %s471_s20 }
  0x3f   :  { %p478_p2 = por %p477_p1, %p476_p0 }
  0x41   :  { %p479_p3 = pnand %p478_p2, %p472_p13 }
  0x43   :  { %482 = shalt.err (!%p479_p3)
}
  0x44   :  { %64 = dma.hbm_to_vmem [thread:$0]  %s703_s3, 512, %s617_s26, [#allocation9], %s539_s9, %s539_s9, %s540_s10  }
  0x45   :  { %527 = dma.done.wait [#allocation3], 256  }
  0x46   :  { %528 = vsyncadd [#allocation3], 4294967040 }
  0x47   :  { %529 = dma.done.wait [#allocation6], 768  }
  0x48   :  { %530 = vsyncadd [#allocation6], 4294966528 }
  0x49   :  { %531 = dma.done.wait [#allocation9], 512  }
  0x4a   :  { %532 = vsyncadd [#allocation9], 4294966784  ;;  %v87_v0 = vld [vmem:[#allocation8] sm:$0xff]  ;;  %v88_v1 = vld [vmem:[#allocation8 + $0x8] sm:$0xff]  ;;  %vm91_vm0 = vcmask 261120   ;;  %s543_s22 = smov [#allocation11]  }
  0x4b   :  { %v83_v2 = vld [vmem:[#allocation7] sm:$0xff]  ;;  %v361_v3 = vpack.c.bf16 %v88_v1, %v87_v0  ;;  %v84_v4 = vld [vmem:[#allocation7 + $0x8] sm:$0xff]  ;;  %v89_v5 = vld [vmem:[#allocation8 + $0x10] sm:$0xff]  ;;  %s302_s23 = sshll.u32 %s543_s22, 4  ;;  %s303_s23 = int_to_ptr.vmem [resolvable:$true] %s302_s23 }
  0x4c   :  { %v90_v6 = vld [vmem:[#allocation8 + $0x18] sm:$0xff]  ;;  %v369_v7 = vpack.c.bf16 %v84_v4, %v83_v2  ;;  %v85_v9 = vld [vmem:[#allocation7 + $0x10] sm:$0xff]  ;;  %v79_v13 = vld [vmem:[#allocation2] sm:$0xff]  ;;  %s483_s26 = scalar_lea.vmem %s303_s23, 256  ;;  %p488_p5 = scmp.lt.s32.totalorder %s303_s23, %s303_s23 }
  0x4d   :  { %v365_v8 = vpack.c.bf16 %v90_v6, %v89_v5  ;;  %v86_v10 = vld [vmem:[#allocation7 + $0x18] sm:$0xff]  ;;  %v654_v11 = vld [vmem:[#allocation5] sm:$0xff]  ;;  %362 = vmatprep.subr.bf16.mxu1 %v361_v3  ;;  %358 = vmatprep.mubr.msk.f32.mxu0 %vm91_vm0, %v79_v13  ;;  %v80_v15 = vld [vmem:[#allocation2 + $0x8] sm:$0xff]  ;;  %p484_p4 = scmp.ne.s32.totalorder %s303_s23, %s483_s26  ;;  %p489_p6 = scmp.lt.s32.totalorder %s483_s26, %s483_s26 }
  0x4e   :  { %v373_v12 = vpack.c.bf16 %v86_v10, %v85_v9  ;;  %347 = vmatprep.mubr.msk.f32.mxu1 %vm91_vm0, %v654_v11  ;;  %370 = vmatprep.subr.bf16.mxu0 %v369_v7  ;;  %v82_v14 = vld [vmem:[#allocation5 + $0x8] sm:$0xff]  ;;  %v324_v18 = vld [vmem:[%s704_s4] ss:$0 sm:$0xff]  ;;  %v275_v32 = vsub.f32 %v79_v13, %v654_v11  ;;  %s544_s4 = smov [#allocation10]  }
  0x4f   :  { %364 = vmatpush3.bf16.msra.mxu1 %v361_v3  ;;  %372 = vmatpush3.bf16.msra.mxu0 %v369_v7  ;;  %v276_v31 = vsub.f32 %v80_v15, %v82_v14  ;;  %s290_s25 = sshll.u32 %s544_s4, 4  ;;  %p490_p7 = por %p489_p6, %p488_p5  ;;  %s291_s25 = int_to_ptr.vmem [resolvable:$true] %s290_s25 }
  0x50   :  { %366 = vmatprep.subr.bf16.mxu1 %v365_v8  ;;  %374 = vmatprep.subr.bf16.mxu0 %v373_v12 }
  0x51   :  { %p491_p8 = pnand %p490_p7, %p484_p4 }
  0x53   :  { %368 = vmatpush3.bf16.msra.mxu1 %v365_v8  ;;  %376 = vmatpush3.bf16.msra.mxu0 %v373_v12 }
  0x56   :  { %348 = vmatmul.mubr.msk.f32.vlgmr.msra.gmra.mrb[0].mxu1 %vm91_vm0, %v82_v14  ;;  %359 = vmatmul.mubr.msk.f32.vlgmr.msra.gmra.mrb[0].mxu0 %vm91_vm0, %v80_v15 }
 0x129   :  { %v349_v16 = vpop.f32.mrb[0].mxu1  ;;  %v360_v17 = vpop.f32.mrb[0].mxu0 }
 0x12a   :  { %v164_v19 = vpop.f32.mrb[1].mxu1  ;;  %v251_v20 = vadd.f32 %v360_v17, %v349_v16  ;;  %v245_v21 = vpop.f32.mrb[1].mxu0 }
 0x12b   :  { %v246_v22 = vadd.f32 %v245_v21, %v164_v19 }
 0x12c   :  { %v262_v23 = vadd.f32 %v324_v18, %v251_v20 }
 0x12d   :  { %v261_v24 = vadd.f32 %v324_v18, %v246_v22 }
 0x12e   :  { %v326_v25 = vmul.f32 -1.442695, %v262_v23 }
 0x12f   :  { %v325_v26 = vmul.f32 -1.442695, %v261_v24 }
 0x130   :  { %387 = vpow2.f32 %v326_v25 }
 0x131   :  { %389 = vpow2.f32 %v325_v26 }
 0x13a   :  { %v388_v27 = vpop.eup %387 }
 0x13b   :  { %v390_v28 = vpop.eup %389  ;;  %v270_v29 = vadd.f32 1.0, %v388_v27 }
 0x13c   :  { %v269_v30 = vadd.f32 1.0, %v390_v28 }
 0x13d   :  { %391 = vrcp.f32 %v270_v29 }
 0x13e   :  { %393 = vrcp.f32 %v269_v30 }
 0x147   :  { %v392_v33 = vpop.eup %391 }
 0x148   :  { %v394_v34 = vpop.eup %393  ;;  %284 = vst.msk [vmem:[#allocation11 + $0x8] sm:$0xff] %vm91_vm0, %v392_v33  ;;  %v278_v35 = vmul.f32 %v392_v33, %v276_v31 }
 0x149   :  { %283 = vst.msk [vmem:[#allocation11] sm:$0xff] %vm91_vm0, %v394_v34  ;;  %v277_v36 = vmul.f32 %v394_v34, %v275_v32 }
 0x14a   :  { %v280_v37 = vadd.f32 %v278_v35, %v82_v14 }
 0x14b   :  { %494 = shalt.err (!%p491_p8)
}
 0x14c   :  { %s495_s29 = scalar_lea.hbm %s706_s6, 256 }
 0x14d   :  { %p496_p9 = scmp.ne.s32.totalorder %s706_s6, %s495_s29  ;;  %p499_p10 = scmp.lt.u32.totalorder %s495_s29, %s706_s6 }
 0x14f   :  { %p501_p11 = pnand %p499_p10, %p496_p9 }
 0x151   :  { %504 = shalt.err (!%p501_p11)
}
 0x152   :  { %308 = dma.vmem_to_hbm [thread:$0]  %s303_s23, 256, %s706_s6, [#allocation12], %s539_s9, %s539_s9, %s540_s10   ;;  %v279_v38 = vadd.f32 %v277_v36, %v654_v11  ;;  %282 = vst.msk [vmem:[#allocation10 + $0x8] sm:$0xff] %vm91_vm0, %v280_v37 }
 0x153   :  { %s505_s12 = scalar_lea.vmem %s291_s25, 256  ;;  %p510_p13 = scmp.lt.s32.totalorder %s291_s25, %s291_s25 }
 0x154   :  { %281 = vst.msk [vmem:[#allocation10] sm:$0xff] %vm91_vm0, %v279_v38  ;;  %p506_p12 = scmp.ne.s32.totalorder %s291_s25, %s505_s12  ;;  %p511_p0 = scmp.lt.s32.totalorder %s505_s12, %s505_s12 }
 0x156   :  { %p512_p1 = por %p511_p0, %p510_p13 }
 0x158   :  { %p513_p2 = pnand %p512_p1, %p506_p12 }
 0x15a   :  { %516 = shalt.err (!%p513_p2)
}
 0x15b   :  { %s517_s15 = scalar_lea.hbm %s705_s5, 256 }
 0x15c   :  { %p518_p3 = scmp.ne.s32.totalorder %s705_s5, %s517_s15  ;;  %p521_p4 = scmp.lt.u32.totalorder %s517_s15, %s705_s5 }
 0x15e   :  { %p523_p5 = pnand %p521_p4, %p518_p3 }
 0x160   :  { %526 = shalt.err (!%p523_p5)
}
 0x161   :  { %296 = dma.vmem_to_hbm [thread:$0]  %s291_s25, 256, %s705_s5, [#allocation4], %s539_s9, %s539_s9, %s540_s10  }
 0x162   :  { %533 = dma.done.wait [#allocation4], 256  }
 0x163   :  { %534 = vsyncadd [#allocation4], 4294967040 }
 0x164   :  { %535 = dma.done.wait [#allocation12], 256  }
 0x165   :  { %536 = vsyncadd [#allocation12], 4294967040 }
 0x166   :  { %315 = vsyncpa [#allocation3], 1 }
 0x167   :  { %316 = vsyncpa [#allocation6], 1 }
 0x168   :  { %317 = vsyncpa [#allocation9], 1 }
 0x169   :  { %318 = vsyncpa [#allocation4], 1 }
 0x16a   :  { %319 = vsyncpa [#allocation12], 1 }

</bundles_post_ra>
